<compile_context>
chip_gen: v5e
topology: v5e:2x2
jax: 0.10.0
libtpu: 0.0.40
codegen_flags: <defaults>
</compile_context>

<pallas_src>
import functools
import jax
import jax.numpy as jnp
from jax.experimental import pallas as pl
from jax.experimental.pallas import tpu as pltpu


def _mha_kernel(x_ref, wqkv_ref, bqkv_ref, wo_ref, bo_ref, o_ref, *, num_heads):
    H = num_heads
    x = x_ref[0]                                   # (S, E)
    S, E = x.shape
    n3h = wqkv_ref.shape[0]                        # 3*H

    # --- QKV projection, heads on the leading axis --------------------------
    # (3H, S, E) @ (3H, E, Dh) -> (3H, S, Dh), batched over the 3H axis.
    xb = jnp.broadcast_to(x[None, :, :], (n3h, S, E))
    qkv = jax.lax.dot_general(
        xb, wqkv_ref[...],
        dimension_numbers=(((2,), (1,)), ((0,), (0,))),
        preferred_element_type=jnp.float32,
    ) + bqkv_ref[...]                              # (3H, S, Dh)

    q = qkv[:H]          # (H, S, Dh)  (scale already folded into weights/bias)
    k = qkv[H:2 * H]     # (H, S, Dh)
    v = qkv[2 * H:]      # (H, S, Dh)

    # --- attention scores + softmax (f32, matches torch's .float() softmax) -
    # Contract the last dims directly: no materialized k transpose.
    s = jax.lax.dot_general(
        q, k,
        dimension_numbers=(((2,), (2,)), ((0,), (0,))),
        preferred_element_type=jnp.float32)        # (H, S, S)
    s = s - jnp.max(s, axis=-1, keepdims=True)
    p = jnp.exp(s)
    denom = jnp.sum(p, axis=-1, keepdims=True)
    p = p * pl.reciprocal(denom, approx=False)     # reciprocal + multiply
    # TODO(synk): attention_dropout (p=0 in the module) is an identity; omitted.

    # --- P @ V, batched over heads -------------------------------------------
    attn = jax.lax.dot_general(
        p, v,
        dimension_numbers=(((2,), (1,)), ((0,), (0,))),
        preferred_element_type=jnp.float32)        # (H, S, Dh)

    # --- output projection: per-head (S,Dh)@(Dh,E), then sum over heads -----
    out_h = jax.lax.dot_general(
        attn, wo_ref[...],
        dimension_numbers=(((2,), (1,)), ((0,), (0,))),
        preferred_element_type=jnp.float32)        # (H, S, E)
    out = jnp.sum(out_h, axis=0) + bo_ref[0]       # (S, E) -- no concat needed

    o_ref[0] = out.astype(o_ref.dtype)


def prepare_mha_params(w_qkv, b_qkv, w_out, b_out, *, num_heads, dimension_per_head):
    """One-time host-side transform of nn.Linear-style parameters.

    Inputs (right-multiplication layout): w_qkv (E, 3E), b_qkv (1, 3E),
    w_out (E, E), b_out (1, E), with the 3E axis ordered [q | k | v] and heads
    contiguous blocks of Dh columns (torch's reshape(B,S,3,H,Dh) semantics).
    Returns head-major params with the attention scale folded into Q.
    """
    E = w_qkv.shape[0]
    H = num_heads
    Dh = E // H
    scale = float(dimension_per_head) ** -0.5
    seg_scale = jnp.concatenate(
        [jnp.full((H, 1, 1), scale, dtype=w_qkv.dtype),
         jnp.ones((2 * H, 1, 1), dtype=w_qkv.dtype)], axis=0)          # (3H,1,1)
    w = w_qkv.reshape(E, 3, H, Dh).transpose(1, 2, 0, 3).reshape(3 * H, E, Dh)
    b = b_qkv.reshape(3, H, Dh).reshape(3 * H, 1, Dh)
    return w * seg_scale, b * seg_scale, w_out.reshape(H, Dh, E), b_out


def multi_head_attention(x, w_qkv_h, b_qkv_h, w_out_h, b_out, *, num_heads):
    B, S, E = x.shape
    H = num_heads
    Dh = E // H

    kernel = functools.partial(_mha_kernel, num_heads=H)

    grid_spec = pltpu.PrefetchScalarGridSpec(
        num_scalar_prefetch=0,
        grid=(B,),
        in_specs=[
            pl.BlockSpec((1, S, E), lambda b: (b, 0, 0)),        # x (one batch/core)
            pl.BlockSpec((3 * H, E, Dh), lambda b: (0, 0, 0)),   # w_qkv (head-major)
            pl.BlockSpec((3 * H, 1, Dh), lambda b: (0, 0, 0)),   # b_qkv (head-major)
            pl.BlockSpec((H, Dh, E), lambda b: (0, 0, 0)),       # w_out (head-major)
            pl.BlockSpec((1, E), lambda b: (0, 0)),              # b_out
        ],
        out_specs=pl.BlockSpec((1, S, E), lambda b: (b, 0, 0)),
    )

    return pl.pallas_call(
        kernel,
        grid_spec=grid_spec,
        out_shape=jax.ShapeDtypeStruct((B, S, E), x.dtype),
        compiler_params=pltpu.CompilerParams(
            dimension_semantics=("parallel",)),    # v7x: one batch per TensorCore
    )(x, w_qkv_h, b_qkv_h, w_out_h, b_out)


def _reference(x, w_qkv, b_qkv, w_out, b_out, *, num_heads, dimension_per_head):
    """Pure-JAX mirror of the PyTorch forward, for verification."""
    B, S, E = x.shape
    Dh = E // num_heads
    scale = float(dimension_per_head) ** -0.5
    qkv = x @ w_qkv + b_qkv[0]                                 # (B, S, 3E)
    qkv = qkv.reshape(B, S, 3, num_heads, Dh)
    qkv = jnp.transpose(qkv, (0, 3, 2, 1, 4))                  # (B, H, 3, S, Dh)
    q, k, v = qkv[:, :, 0], qkv[:, :, 1], qkv[:, :, 2]
    q = q * scale
    scores = jnp.einsum('bhqd,bhkd->bhqk', q, k)
    scores = jax.nn.softmax(scores.astype(jnp.float32), axis=-1).astype(scores.dtype)
    out = jnp.einsum('bhqk,bhkd->bhqd', scores, v)             # (B, H, S, Dh)
    out = jnp.transpose(out, (0, 2, 1, 3)).reshape(B, S, E)
    return out @ w_out + b_out[0]


if __name__ == "__main__":
    # Module config: embedding_dimension=32, num_heads=4, dimension_per_head=8
    B, S, E = 2, 8, 32
    H, DPH = 4, 8

    key = jax.random.PRNGKey(0)
    kx, k1, k2, k3, k4 = jax.random.split(key, 5)

    x = jax.random.normal(kx, (B, S, E), dtype=jnp.float32)
    # Deterministic synthetic parameters (shapes as implied by nn.Linear init).
    bound = 1.0 / (E ** 0.5)
    w_qkv = jax.random.uniform(k1, (E, 3 * E), minval=-bound, maxval=bound,
                               dtype=jnp.float32)
    b_qkv = jax.random.uniform(k2, (1, 3 * E), minval=-bound, maxval=bound,
                               dtype=jnp.float32)
    w_out = jax.random.uniform(k3, (E, E), minval=-bound, maxval=bound,
                               dtype=jnp.float32)
    b_out = jax.random.uniform(k4, (1, E), minval=-bound, maxval=bound,
                               dtype=jnp.float32)

    # One-time host-side parameter preparation (head-major, scale folded in).
    w_qkv_h, b_qkv_h, w_out_h, b_out_h = prepare_mha_params(
        w_qkv, b_qkv, w_out, b_out, num_heads=H, dimension_per_head=DPH)

    out = multi_head_attention(x, w_qkv_h, b_qkv_h, w_out_h, b_out_h, num_heads=H)
    out = jax.block_until_ready(out)

    ref = _reference(x, w_qkv, b_qkv, w_out, b_out,
                     num_heads=H, dimension_per_head=DPH)
    assert out.shape == (B, S, E)
    assert jnp.allclose(out, ref, atol=1e-4, rtol=1e-4), "mismatch vs reference"

    print("KERNEL_OK")
</pallas_src>

<mosaic_0001>
module attributes {stable_mosaic.version = 11 : i64} {
  func.func @_mha_kernel(%arg0: i32, %arg1: memref<1x8x32xf32, #tpu.memory_space<vmem>>, %arg2: memref<12x32x8xf32, #tpu.memory_space<vmem>>, %arg3: memref<12x1x8xf32, #tpu.memory_space<vmem>>, %arg4: memref<4x8x32xf32, #tpu.memory_space<vmem>>, %arg5: memref<1x32xf32, #tpu.memory_space<vmem>>, %arg6: memref<1x8x32xf32, #tpu.memory_space<vmem>>) attributes {dimension_semantics = [#tpu.dimension_semantics<parallel>], iteration_bounds = array<i64: 2>, scalar_prefetch = 0 : i64, scratch_operands = 0 : i64, tpu.core_type = #tpu.core_type<tc>, window_params = [{transform_indices = @transform_0, window_bounds = array<i64: 1, 8, 32>}, {pipeline_mode = #tpu.pipeline_mode<synchronous>, transform_indices = @transform_1, window_bounds = array<i64: 12, 32, 8>}, {pipeline_mode = #tpu.pipeline_mode<synchronous>, transform_indices = @transform_2, window_bounds = array<i64: 12, 1, 8>}, {pipeline_mode = #tpu.pipeline_mode<synchronous>, transform_indices = @transform_3, window_bounds = array<i64: 4, 8, 32>}, {pipeline_mode = #tpu.pipeline_mode<synchronous>, transform_indices = @transform_4, window_bounds = array<i64: 1, 32>}, {transform_indices = @transform_5, window_bounds = array<i64: 1, 8, 32>}]} {
    %c0 = arith.constant 0 : index
    %c0_0 = arith.constant 0 : index
    %c0_1 = arith.constant 0 : index
    %0 = vector.load %arg1[%c0, %c0_0, %c0_1] : memref<1x8x32xf32, #tpu.memory_space<vmem>>, vector<1x8x32xf32>
    %1 = vector.shape_cast %0 : vector<1x8x32xf32> to vector<8x32xf32>
    %2 = vector.shape_cast %1 : vector<8x32xf32> to vector<1x8x32xf32>
    %3 = vector.shape_cast %2 : vector<1x8x32xf32> to vector<1x8x32xf32>
    %4 = vector.broadcast %3 : vector<1x8x32xf32> to vector<12x8x32xf32>
    %c0_2 = arith.constant 0 : index
    %c0_3 = arith.constant 0 : index
    %c0_4 = arith.constant 0 : index
    %5 = vector.load %arg2[%c0_2, %c0_3, %c0_4] : memref<12x32x8xf32, #tpu.memory_space<vmem>>, vector<12x32x8xf32>
    %cst = arith.constant dense<0.000000e+00> : vector<12x8x8xf32>
    %6 = tpu.matmul %4, %5, %cst {dimension_numbers = #tpu.dot_dimension_numbers<[2], [1], [1], [2], [0, 0, 0, 1, 1, 2], [0], [0]>} : vector<12x8x32xf32>, vector<12x32x8xf32>, vector<12x8x8xf32> -> vector<12x8x8xf32>
    %c0_5 = arith.constant 0 : index
    %c0_6 = arith.constant 0 : index
    %c0_7 = arith.constant 0 : index
    %7 = vector.load %arg3[%c0_5, %c0_6, %c0_7] : memref<12x1x8xf32, #tpu.memory_space<vmem>>, vector<12x1x8xf32>
    %8 = vector.broadcast %7 : vector<12x1x8xf32> to vector<12x8x8xf32>
    %9 = arith.addf %6, %8 : vector<12x8x8xf32>
    %10 = vector.extract_strided_slice %9 {offsets = [0, 0, 0], sizes = [4, 8, 8], strides = [1, 1, 1]} : vector<12x8x8xf32> to vector<4x8x8xf32>
    %11 = vector.extract_strided_slice %9 {offsets = [4, 0, 0], sizes = [4, 8, 8], strides = [1, 1, 1]} : vector<12x8x8xf32> to vector<4x8x8xf32>
    %12 = vector.extract_strided_slice %9 {offsets = [8, 0, 0], sizes = [4, 8, 8], strides = [1, 1, 1]} : vector<12x8x8xf32> to vector<4x8x8xf32>
    %cst_8 = arith.constant dense<0.000000e+00> : vector<4x8x8xf32>
    %13 = tpu.matmul %10, %11, %cst_8 {dimension_numbers = #tpu.dot_dimension_numbers<[2], [2], [1], [1], [0, 0, 0, 1, 1, 1], [0], [0]>} : vector<4x8x8xf32>, vector<4x8x8xf32>, vector<4x8x8xf32> -> vector<4x8x8xf32>
    %cst_9 = arith.constant dense<0xFF800000> : vector<4x8xf32>
    %14 = vector.multi_reduction <maximumf>, %13, %cst_9 [2] : vector<4x8x8xf32> to vector<4x8xf32>
    %15 = vector.shape_cast %14 : vector<4x8xf32> to vector<4x8x1xf32>
    %16 = vector.broadcast %15 : vector<4x8x1xf32> to vector<4x8x8xf32>
    %17 = arith.subf %13, %16 : vector<4x8x8xf32>
    %18 = math.exp %17 : vector<4x8x8xf32>
    %cst_10 = arith.constant dense<0.000000e+00> : vector<4x8xf32>
    %19 = vector.multi_reduction <add>, %18, %cst_10 [2] : vector<4x8x8xf32> to vector<4x8xf32>
    %20 = vector.shape_cast %19 : vector<4x8xf32> to vector<4x8x1xf32>
    %21 = tpu.reciprocal %20 : vector<4x8x1xf32> -> vector<4x8x1xf32>
    %22 = vector.broadcast %21 : vector<4x8x1xf32> to vector<4x8x8xf32>
    %23 = arith.mulf %18, %22 : vector<4x8x8xf32>
    %cst_11 = arith.constant dense<0.000000e+00> : vector<4x8x8xf32>
    %24 = tpu.matmul %23, %12, %cst_11 {dimension_numbers = #tpu.dot_dimension_numbers<[2], [1], [1], [2], [0, 0, 0, 1, 1, 2], [0], [0]>} : vector<4x8x8xf32>, vector<4x8x8xf32>, vector<4x8x8xf32> -> vector<4x8x8xf32>
    %c0_12 = arith.constant 0 : index
    %c0_13 = arith.constant 0 : index
    %c0_14 = arith.constant 0 : index
    %25 = vector.load %arg4[%c0_12, %c0_13, %c0_14] : memref<4x8x32xf32, #tpu.memory_space<vmem>>, vector<4x8x32xf32>
    %cst_15 = arith.constant dense<0.000000e+00> : vector<4x8x32xf32>
    %26 = tpu.matmul %24, %25, %cst_15 {dimension_numbers = #tpu.dot_dimension_numbers<[2], [1], [1], [2], [0, 0, 0, 1, 1, 2], [0], [0]>} : vector<4x8x8xf32>, vector<4x8x32xf32>, vector<4x8x32xf32> -> vector<4x8x32xf32>
    %cst_16 = arith.constant dense<0.000000e+00> : vector<8x32xf32>
    %27 = vector.multi_reduction <add>, %26, %cst_16 [0] : vector<4x8x32xf32> to vector<8x32xf32>
    %c0_17 = arith.constant 0 : index
    %c0_18 = arith.constant 0 : index
    %28 = vector.load %arg5[%c0_17, %c0_18] : memref<1x32xf32, #tpu.memory_space<vmem>>, vector<1x32xf32>
    %29 = vector.shape_cast %28 : vector<1x32xf32> to vector<32xf32>
    %30 = vector.shape_cast %29 : vector<32xf32> to vector<1x32xf32>
    %31 = vector.broadcast %30 : vector<1x32xf32> to vector<8x32xf32>
    %32 = arith.addf %27, %31 : vector<8x32xf32>
    %c0_19 = arith.constant 0 : index
    %c0_20 = arith.constant 0 : index
    %c0_21 = arith.constant 0 : index
    %33 = vector.load %arg6[%c0_19, %c0_20, %c0_21] : memref<1x8x32xf32, #tpu.memory_space<vmem>>, vector<1x8x32xf32>
    %34 = vector.shape_cast %33 : vector<1x8x32xf32> to vector<8x32xf32>
    %35 = vector.shape_cast %32 : vector<8x32xf32> to vector<1x8x32xf32>
    tpu.vector_store %arg6[%c0_19, %c0_20, %c0_21], %35 {strides = array<i32>} : memref<1x8x32xf32, #tpu.memory_space<vmem>>, vector<1x8x32xf32>,
    return
  }
  func.func @transform_0(%arg0: i32) -> (i32, i32, i32) {
    %c0_i32 = arith.constant 0 : i32
    %c0_i32_0 = arith.constant 0 : i32
    %c0_i32_1 = arith.constant 0 : i32
    return %arg0, %c0_i32, %c0_i32_0 : i32, i32, i32
  }
  func.func @transform_1(%arg0: i32) -> (i32, i32, i32) {
    %c0_i32 = arith.constant 0 : i32
    %c0_i32_0 = arith.constant 0 : i32
    %c0_i32_1 = arith.constant 0 : i32
    %c0_i32_2 = arith.constant 0 : i32
    return %c0_i32, %c0_i32_0, %c0_i32_1 : i32, i32, i32
  }
  func.func @transform_2(%arg0: i32) -> (i32, i32, i32) {
    %c0_i32 = arith.constant 0 : i32
    %c0_i32_0 = arith.constant 0 : i32
    %c0_i32_1 = arith.constant 0 : i32
    %c0_i32_2 = arith.constant 0 : i32
    return %c0_i32, %c0_i32_0, %c0_i32_1 : i32, i32, i32
  }
  func.func @transform_3(%arg0: i32) -> (i32, i32, i32) {
    %c0_i32 = arith.constant 0 : i32
    %c0_i32_0 = arith.constant 0 : i32
    %c0_i32_1 = arith.constant 0 : i32
    %c0_i32_2 = arith.constant 0 : i32
    return %c0_i32, %c0_i32_0, %c0_i32_1 : i32, i32, i32
  }
  func.func @transform_4(%arg0: i32) -> (i32, i32) {
    %c0_i32 = arith.constant 0 : i32
    %c0_i32_0 = arith.constant 0 : i32
    %c0_i32_1 = arith.constant 0 : i32
    return %c0_i32, %c0_i32_0 : i32, i32
  }
  func.func @transform_5(%arg0: i32) -> (i32, i32, i32) {
    %c0_i32 = arith.constant 0 : i32
    %c0_i32_0 = arith.constant 0 : i32
    %c0_i32_1 = arith.constant 0 : i32
    return %arg0, %c0_i32, %c0_i32_0 : i32, i32, i32
  }
}

</mosaic_0001>

<bundles_post_ra>
// kernel: tpu_custom_call.1
= control target key start
LH: loop header
LB: loop body
LE: loop exit
PB: predicated region body
PF: predicated region fallthrough
CT: control target
= control target key end

     0   :  { %10 = vsyncpa [#allocation3], 0  ;;  %s1581_s0 = inlined_call_operand.vmem [shape: f32[2,8,32], index: 0, kind: input, shape index: {}]   ;;  %s1582_s1 = inlined_call_operand.vmem [shape: f32[12,32,8], index: 1, kind: input, shape index: {}]   ;;  %s1583_s2 = inlined_call_operand.vmem [shape: f32[12,1,8], index: 2, kind: input, shape index: {}]   ;;  %s1584_s3 = inlined_call_operand.vmem [shape: f32[4,8,32], index: 3, kind: input, shape index: {}]   ;;  %s1585_s4 = inlined_call_operand.vmem [shape: f32[1,32], index: 4, kind: input, shape index: {}]   ;;  %s1586_s5 = inlined_call_operand.hbm [shape: f32[2,8,32], index: 5, kind: output, shape index: {}]  }
   0x1   :  { %12 = vsyncpa [#allocation3 + $0x1], 0  ;;  %s1238_s18 = smov 0   ;;  %s1240_s19 = smov 0  }
   0x2   :  { %s1242_s20 = smov 0   ;;  %s1244_s21 = smov 0  }
   0x3 LB: > { %s1259_s22 = sadd.s32 4294967295, %s1206_s21   ;;  %s1038_s23 = sadd.s32 4294967294, %s1206_s21   ;;  %s1206_s21 = sphi %s1244_s21, %s1592_s21   ;;  %s1202_s20 = sphi %s1242_s20, %s1591_s20   ;;  %s1198_s19 = sphi %s1240_s19, %s1590_s19   ;;  %s1194_s18 = sphi %s1238_s18, %s1589_s18  }
   0x4   : > { %s1263_s24 = sadd.s32 1, %s1206_s21   ;;  %s135_s25 = sadd.s32 1, %s1202_s20 }
   0x5   : > { %s132_s26 = ssub.s32 %s1206_s21, %s1263_s24  ;;  %p145_p0 = scmp.ne.s32.totalorder %s1202_s20, %s1198_s19 }
   0x6   : > { %p133_p1 = scmp.eq.s32.totalorder %s132_s26, 0  ;;  %p146_p2 = scmp.eq.s32.totalorder %s1259_s22, 1 }
   0x7   : > { %p151_p3 = scmp.ne.s32.totalorder %s1198_s19, %s1194_s18  ;;  %p152_p4 = scmp.eq.s32.totalorder %s1038_s23, 1 }
   0x8   : > { %s1274_s27 = scalar_select %p133_p1, %s1202_s20, %s135_s25  }
   0x9   : > { %p1276_p5 = por %p146_p2, %p145_p0  ;;  %p1280_p6 = por %p152_p4, %p151_p3 }
   0xa   : > { %p1041_p7 = scmp.ge.s32.totalorder %s1206_s21, 1  ;;  %p189_p8 = scmp.lt.s32.totalorder %s1206_s21, 3 }
   0xc   : > { %p190_p9 = pnand %p1041_p7, %p189_p8 }
   0xd   : > { %p216_p10 = scmp.lt.s32.totalorder (!%p190_p9), %s1259_s22, 1  ;;  %s213_s10 = sand.u32 (!%p190_p9), 1, %s1198_s19  }
   0xe   : > { %193 = sbr.rel (%p190_p9) target bundleno = 850 (0x352), region = 40  ;;  %s1042_s11 = sshll.u32 (!%p190_p9), %s213_s10, 3 }
   0xf   : > { %s215_s23 = scalar_lea.vmem (!%p190_p9), [#allocation2], %s1042_s11  ;;  %s964_s26 = scalar_lea.sflag (!%p190_p9), [#allocation3], %s213_s10 }
  0x10   : > { %s1164_s9 = scalar_lea.hbm (!%p190_p9), %s1586_s5, 16 }
  0x13   : > { %v224_v0 = vld [vmem:[%s1582_s1 + $0x18] sm:$0xff]  ;;  %v223_v3 = vld [vmem:[%s1582_s1 + $0x10] sm:$0xff]  ;;  %v222_v6 = vld [vmem:[%s1582_s1 + $0x8] sm:$0xff]  ;;  %s217_s30 = scalar_select %p216_p10, %s1259_s22, 1  ;;  %vm317_vm0 = vcmask 261120   ;;  %vm561_vm1 = vcmask 64512  }
  0x14   : > { %v232_v1 = vld [vmem:[%s1582_s1 + $0x58] sm:$0xff]  ;;  %333 = vmatpush.msra.mxu0 %v224_v0  ;;  %v231_v4 = vld [vmem:[%s1582_s1 + $0x50] sm:$0xff]  ;;  %v230_v7 = vld [vmem:[%s1582_s1 + $0x48] sm:$0xff] }
  0x15   : > { %v236_v2 = vld [vmem:[%s1582_s1 + $0x78] sm:$0xff]  ;;  %373 = vmatpush.msra.mxu2 %v232_v1  ;;  %v235_v5 = vld [vmem:[%s1582_s1 + $0x70] sm:$0xff]  ;;  %v234_v8 = vld [vmem:[%s1582_s1 + $0x68] sm:$0xff]  ;;  %s1043_s12 = sshll.u32 %s217_s30, 3 }
  0x16   : > { %393 = vmatpush.msra.mxu3 %v236_v2  ;;  %334 = vmatpush.msra.mxu0 %v223_v3  ;;  %v221_v9 = vld [vmem:[%s1582_s1] sm:$0xff]  ;;  %v228_v11 = vld [vmem:[%s1582_s1 + $0x38] sm:$0xff]  ;;  %s219_s25 = scalar_lea.vmem %s1581_s0, %s1043_s12  ;;  %v227_v17 = vld [vmem:[%s1582_s1 + $0x30] sm:$0xff]  ;;  %s1073_s12 = sshll.u32 %s1259_s22, 3 }
  0x17   : > { %374 = vmatpush.msra.mxu2 %v231_v4  ;;  %v229_v10 = vld [vmem:[%s1582_s1 + $0x40] sm:$0xff]  ;;  %353 = vmatpush.msra.mxu1 %v228_v11  ;;  %v240_v14 = vld [vmem:[%s1582_s1 + $0x98] sm:$0xff]  ;;  %v239_v18 = vld [vmem:[%s1582_s1 + $0x90] sm:$0xff]  ;;  %s974_s15 = scalar_lea.hbm %s1586_s5, %s1073_s12  ;;  %s976_s22 = sshll.u32 %s215_s23, 4  ;;  %s977_s22 = int_to_ptr.vmem [resolvable:$true] %s976_s22 }
  0x18   : > { %394 = vmatpush.msra.mxu3 %v235_v5  ;;  %335 = vmatpush.msra.mxu0 %v222_v6  ;;  %v233_v12 = vld [vmem:[%s1582_s1 + $0x60] sm:$0xff]  ;;  %v248_v15 = vld [vmem:[%s1582_s1 + $0xd8] sm:$0xff]  ;;  %v247_v19 = vld [vmem:[%s1582_s1 + $0xd0] sm:$0xff] }
  0x19   : > { %375 = vmatpush.msra.mxu2 %v230_v7  ;;  %v1330_v13 = vld [vmem:[%s219_s25] sm:$0xff]  ;;  %v252_v16 = vld [vmem:[%s1582_s1 + $0xf8] sm:$0xff]  ;;  %v251_v20 = vld [vmem:[%s1582_s1 + $0xf0] sm:$0xff]  ;;  %354 = vmatpush.msra.mxu1 %v227_v17  ;;  %s978_s25 = sshll.u32 %s974_s15, 4  ;;  %s979_s25 = int_to_ptr.hbm [resolvable:$true] %s978_s25 }
  0x1a   : > { %395 = vmatpush.msra.mxu3 %v234_v8  ;;  %336 = vmatpush.msra.mxu0 %v221_v9  ;;  %v226_v21 = vld [vmem:[%s1582_s1 + $0x28] sm:$0xff]  ;;  %v225_v25 = vld [vmem:[%s1582_s1 + $0x20] sm:$0xff]  ;;  %v244_v29 = vld [vmem:[%s1582_s1 + $0xb8] sm:$0xff]  ;;  %s1158_s30 = sshra.s32 %s979_s25, 4  ;;  %s1159_s30 = int_to_ptr.hbm [resolvable:$true] %s1158_s30 }
  0x1b   : > { %376 = vmatpush.msra.mxu2 %v229_v10  ;;  %1044 = vmatmul.msk.f32.vlgmr.msra.gmra.mxu0 %vm317_vm0, %v1330_v13  ;;  %v238_v22 = vld [vmem:[%s1582_s1 + $0x88] sm:$0xff]  ;;  %v237_v26 = vld [vmem:[%s1582_s1 + $0x80] sm:$0xff]  ;;  %v256_v30 = vld [vmem:[%s1582_s1 + $0x118] sm:$0xff]  ;;  %s1160_s6 = scalar_lea.hbm %s1159_s30, 8  ;;  %p1165_p0 = scmp.lt.s32.totalorder %s1159_s30, %s1586_s5 }
  0x1c   : > { %396 = vmatpush.msra.mxu3 %v233_v12  ;;  %1046 = vmatmul.msk.f32.vlgmr.msra.gmra.mxu2 %vm317_vm0, %v1330_v13  ;;  %v246_v23 = vld [vmem:[%s1582_s1 + $0xc8] sm:$0xff]  ;;  %v245_v27 = vld [vmem:[%s1582_s1 + $0xc0] sm:$0xff]  ;;  %v243_v31 = vld [vmem:[%s1582_s1 + $0xb0] sm:$0xff]  ;;  %p1161_p11 = scmp.ne.s32.totalorder %s1159_s30, %s1160_s6  ;;  %p1166_p1 = scmp.lt.s32.totalorder %s1164_s9, %s1160_s6 }
  0x1d   : > { %1047 = vmatmul.msk.f32.vlgmr.msra.gmra.mxu3 %vm317_vm0, %v1330_v13  ;;  %413 = vmatpush.msrb.mxu0 %v240_v14  ;;  %v250_v24 = vld [vmem:[%s1582_s1 + $0xe8] sm:$0xff]  ;;  %v249_v28 = vld [vmem:[%s1582_s1 + $0xe0] sm:$0xff]  ;;  %v255_v34 = vld [vmem:[%s1582_s1 + $0x110] sm:$0xff] }
  0x1e   : > { %453 = vmatpush.msrb.mxu2 %v248_v15  ;;  %473 = vmatpush.msrb.mxu3 %v252_v16  ;;  %v242_v32 = vld [vmem:[%s1582_s1 + $0xa8] sm:$0xff]  ;;  %v241_v33 = vld [vmem:[%s1582_s1 + $0xa0] sm:$0xff]  ;;  %v264_v36 = vld [vmem:[%s1582_s1 + $0x158] sm:$0xff]  ;;  %p1162_p12 = pnand %p1161_p11, %p1276_p5  ;;  %p1167_p2 = por %p1166_p1, %p1165_p0 }
  0x1f   : > { %414 = vmatpush.msrb.mxu0 %v239_v18  ;;  %355 = vmatpush.msra.mxu1 %v226_v21  ;;  %v254_v35 = vld [vmem:[%s1582_s1 + $0x108] sm:$0xff]  ;;  %v268_v37 = vld [vmem:[%s1582_s1 + $0x178] sm:$0xff]  ;;  %v253_v38 = vld [vmem:[%s1582_s1 + $0x100] sm:$0xff] }
  0x20   : > { %454 = vmatpush.msrb.mxu2 %v247_v19  ;;  %474 = vmatpush.msrb.mxu3 %v251_v20  ;;  %v260_v39 = vld [vmem:[%s1582_s1 + $0x138] sm:$0xff]  ;;  %v263_v40 = vld [vmem:[%s1582_s1 + $0x150] sm:$0xff]  ;;  %v262_v43 = vld [vmem:[%s1582_s1 + $0x148] sm:$0xff]  ;;  %p1163_p13 = pneg %p1162_p12 }
  0x21   : > { %415 = vmatpush.msrb.mxu0 %v238_v22  ;;  %356 = vmatpush.msra.mxu1 %v225_v25  ;;  %v267_v41 = vld [vmem:[%s1582_s1 + $0x170] sm:$0xff]  ;;  %v266_v44 = vld [vmem:[%s1582_s1 + $0x168] sm:$0xff]  ;;  %v261_v46 = vld [vmem:[%s1582_s1 + $0x140] sm:$0xff] }
  0x22   : > { %455 = vmatpush.msrb.mxu2 %v246_v23  ;;  %475 = vmatpush.msrb.mxu3 %v250_v24  ;;  %v259_v42 = vld [vmem:[%s1582_s1 + $0x130] sm:$0xff]  ;;  %v258_v45 = vld [vmem:[%s1582_s1 + $0x128] sm:$0xff]  ;;  %v265_v47 = vld [vmem:[%s1582_s1 + $0x160] sm:$0xff]  ;;  %p1168_p3 = pnand %p1167_p2, %p1163_p13 }
  0x23   : > { %416 = vmatpush.msrb.mxu0 %v237_v26  ;;  %1045 = vmatmul.msk.f32.vlgmr.msra.gmra.mxu1 %vm317_vm0, %v1330_v13  ;;  %v257_v48 = vld [vmem:[%s1582_s1 + $0x120] sm:$0xff]  ;;  %v1123_v9 = vld [vmem:[%s1583_s2 + $0x8] ss:$0 sm:$0xff]  ;;  %v1124_v12 = vld [vmem:[%s1583_s2 + $0x9] ss:$0 sm:$0xff] }
  0x24   : > { %456 = vmatpush.msrb.mxu2 %v245_v27  ;;  %476 = vmatpush.msrb.mxu3 %v249_v28  ;;  %v1119_v52 = vld [vmem:[%s1583_s2 + $0x4] ss:$0 sm:$0xff]  ;;  %v1115_v53 = vld [vmem:[%s1583_s2] ss:$0 sm:$0xff]  ;;  %v1120_v58 = vld [vmem:[%s1583_s2 + $0x6] ss:$0 sm:$0xff] }
  0x25   : > { %1048 = vmatmul.msk.f32.vlgmr.msrb.gmra.mxu0 %vm317_vm0, %v1330_v13  ;;  %1050 = vmatmul.msk.f32.vlgmr.msrb.gmra.mxu2 %vm317_vm0, %v1330_v13  ;;  %v1121_v59 = vld [vmem:[%s1583_s2 + $0x7] ss:$0 sm:$0xff]  ;;  %v1122_v60 = vld [vmem:[%s1583_s2 + $0x5] ss:$0 sm:$0xff]  ;;  %v1116_v61 = vld [vmem:[%s1583_s2 + $0x2] ss:$0 sm:$0xff] }
  0x26   : > { %1051 = vmatmul.msk.f32.vlgmr.msrb.gmra.mxu3 %vm317_vm0, %v1330_v13  ;;  %433 = vmatpush.msrb.mxu1 %v244_v29  ;;  %v1118_v62 = vld [vmem:[%s1583_s2 + $0x1] ss:$0 sm:$0xff]  ;;  %v1117_v0 = vld [vmem:[%s1583_s2 + $0x3] ss:$0 sm:$0xff]  ;;  %v1125_v15 = vld [vmem:[%s1583_s2 + $0xa] ss:$0 sm:$0xff] }
  0x27   : > { %493 = vmatpush.msra.mxu0 %v256_v30  ;;  %533 = vmatpush.msra.mxu2 %v264_v36  ;;  %v1126_v16 = vld [vmem:[%s1583_s2 + $0xb] ss:$0 sm:$0xff] }
  0x28   : > { %434 = vmatpush.msrb.mxu1 %v243_v31  ;;  %553 = vmatpush.msra.mxu3 %v268_v37 }
  0x29   : > { %494 = vmatpush.msra.mxu0 %v255_v34  ;;  %534 = vmatpush.msra.mxu2 %v263_v40 }
  0x2a   : > { %435 = vmatpush.msrb.mxu1 %v242_v32  ;;  %554 = vmatpush.msra.mxu3 %v267_v41 }
  0x2b   : > { %495 = vmatpush.msra.mxu0 %v254_v35  ;;  %535 = vmatpush.msra.mxu2 %v262_v43 }
  0x2c   : > { %436 = vmatpush.msrb.mxu1 %v241_v33  ;;  %555 = vmatpush.msra.mxu3 %v266_v44 }
  0x2d   : > { %1049 = vmatmul.msk.f32.vlgmr.msrb.gmra.mxu1 %vm317_vm0, %v1330_v13  ;;  %496 = vmatpush.msra.mxu0 %v253_v38 }
  0x2e   : > { %1052 = vmatmul.msk.f32.vlgmr.msra.gmra.mxu0 %vm317_vm0, %v1330_v13  ;;  %513 = vmatpush.msra.mxu1 %v260_v39 }
  0x2f   : > { %536 = vmatpush.msra.mxu2 %v261_v46  ;;  %556 = vmatpush.msra.mxu3 %v265_v47 }
  0x30   : > { %514 = vmatpush.msra.mxu1 %v259_v42  ;;  %1054 = vmatmul.msk.f32.vlgmr.msra.gmra.mxu2 %vm317_vm0, %v1330_v13 }
  0x31   : > { %1055 = vmatmul.msk.f32.vlgmr.msra.gmra.mxu3 %vm317_vm0, %v1330_v13 }
  0x32   : > { %515 = vmatpush.msra.mxu1 %v258_v45 }
  0x34   : > { %516 = vmatpush.msra.mxu1 %v257_v48 }
  0x35   : > { %1053 = vmatmul.msk.f32.vlgmr.msra.gmra.mxu1 %vm317_vm0, %v1330_v13 }
  0x98   : > { %v338_v49 = vpop.f32.mrf.mxu0 }
  0x99   : > { %v339_v57 = vadd.f32 %v1115_v53, %v338_v49 }
  0x9f   : > { %v378_v50 = vpop.f32.mrf.mxu2 }
  0xa0   : > { %v398_v51 = vpop.f32.mrf.mxu3  ;;  %v358_v54 = vpop.f32.mrf.mxu1  ;;  %v379_v6 = vadd.f32 %v1116_v61, %v378_v50 }
  0xa1   : > { %v359_v7 = vadd.f32 %v1118_v62, %v358_v54  ;;  %v399_v8 = vadd.f32 %v1117_v0, %v398_v51 }
  0xa2   : > { %v418_v55 = vpop.f32.mrf.mxu0 }
  0xa3   : > { %v419_v56 = vadd.f32 %v1119_v52, %v418_v55 }
  0xa5   : > { %1056 = vmatpush.xpose.msk.msrb.mxu0 %vm561_vm1, %v419_v56 }
  0xa8   : > { %v458_v63 = vpop.f32.mrf.mxu2  ;;  %1057 = vmatmul.msk.f32.vlgmr.msrb.gmra.mxu0 %vm561_vm1, %v339_v57 }
  0xa9   : > { %v459_v1 = vadd.f32 %v1120_v58, %v458_v63  ;;  %v478_v2 = vpop.f32.mrf.mxu3 }
  0xaa   : > { %v479_v3 = vadd.f32 %v1121_v59, %v478_v2  ;;  %v438_v4 = vpop.f32.mrf.mxu1 }
  0xab   : > { %v439_v5 = vadd.f32 %v1122_v60, %v438_v4  ;;  %1060 = vmatpush.xpose.msk.msrb.mxu2 %vm561_vm1, %v459_v1  ;;  %v498_v10 = vpop.f32.mrf.mxu0 }
  0xac   : > { %1062 = vmatpush.xpose.msk.msrb.mxu3 %vm561_vm1, %v479_v3  ;;  %v499_v11 = vadd.f32 %v1123_v9, %v498_v10 }
  0xad   : > { %1058 = vmatpush.xpose.msk.msrb.mxu1 %vm561_vm1, %v439_v5 }
  0xae   : > { %1061 = vmatmul.msk.f32.vlgmr.msrb.gmra.mxu2 %vm561_vm1, %v379_v6  ;;  %780 = vmatpush.msra.mxu0 %v499_v11 }
  0xaf   : > { %1063 = vmatmul.msk.f32.vlgmr.msrb.gmra.mxu3 %vm561_vm1, %v399_v8 }
  0xb0   : > { %1059 = vmatmul.msk.f32.vlgmr.msrb.gmra.mxu1 %vm561_vm1, %v359_v7 }
  0xb2   : > { %v518_v13 = vpop.f32.mrf.mxu1 }
  0xb3   : > { %v519_v14 = vadd.f32 %v1124_v12, %v518_v13  ;;  %v538_v17 = vpop.f32.mrf.mxu2 }
  0xb4   : > { %v539_v18 = vadd.f32 %v1125_v15, %v538_v17  ;;  %v558_v19 = vpop.f32.mrf.mxu3 }
  0xb5   : > { %803 = vmatpush.msra.mxu1 %v519_v14  ;;  %v559_v20 = vadd.f32 %v1126_v16, %v558_v19 }
  0xb6   : > { %826 = vmatpush.msra.mxu2 %v539_v18 }
  0xb7   : > { %849 = vmatpush.msra.mxu3 %v559_v20 }
 0x125   : > { %v585_v21 = vpop.f32.mrf.mxu0 }
 0x126   : > { %v666_v22 = vsel %vm561_vm1, %v585_v21, -inf }
 0x127   : > { %667 = vmax.xlane.f32.xlu1 %v666_v22 }
 0x12d   : > { %v611_v23 = vpop.f32.mrf.mxu1 }
 0x12e   : > { %v669_v24 = vsel %vm561_vm1, %v611_v23, -inf }
 0x12f   : > { %670 = vmax.xlane.f32.xlu1 %v669_v24 }
 0x131   : > { %v637_v25 = vpop.f32.mrf.mxu2 }
 0x132   : > { %v672_v26 = vsel %vm561_vm1, %v637_v25, -inf  ;;  %v663_v27 = vpop.f32.mrf.mxu3 }
 0x133   : > { %673 = vmax.xlane.f32.xlu0 %v672_v26  ;;  %v675_v28 = vsel %vm561_vm1, %v663_v27, -inf }
 0x13b   : > { %676 = vmax.xlane.f32.xlu0 %v675_v28 }
 0x19a   : > { %v668_v29 = vpop.xlane.xlu1 %667 }
 0x19b   : > { %v678_v30 = vsub.f32 %v585_v21, %v668_v29 }
 0x19d   : > { %v682_v31 = vmul.f32 1.442695, %v678_v30 }
 0x19f   : > { %1128 = vpow2.f32 %v682_v31 }
 0x1a2   : > { %v671_v32 = vpop.xlane.xlu1 %670 }
 0x1a3   : > { %v679_v33 = vsub.f32 %v611_v23, %v671_v32 }
 0x1a5   : > { %v1129_v34 = vpop.eup %1128  ;;  %v684_v35 = vmul.f32 1.442695, %v679_v33  ;;  %v854_v33 = vld [vmem:[%s1584_s3] sm:$0xff] }
 0x1a6   : > { %v674_v36 = vpop.xlane.xlu0 %673  ;;  %v690_v37 = vsel %vm561_vm1, %v1129_v34, 0.0  ;;  %876 = vmatpush.msrb.mxu0 %v854_v33 }
 0x1a7   : > { %1130 = vpow2.f32 %v684_v35  ;;  %v680_v38 = vsub.f32 %v637_v25, %v674_v36  ;;  %691 = vadd.xlane.f32.xlu0 %v690_v37  ;;  %v856_v35 = vld [vmem:[%s1584_s3 + $0x10] sm:$0xff]  ;;  %v857_v36 = vld [vmem:[%s1584_s3 + $0x18] sm:$0xff] }
 0x1a8   : > { %922 = vmatpush.msrb.mxu2 %v856_v35  ;;  %945 = vmatpush.msrb.mxu3 %v857_v36 }
 0x1a9   : > { %v686_v39 = vmul.f32 1.442695, %v680_v38 }
 0x1ab   : > { %1132 = vpow2.f32 %v686_v39 }
 0x1ad   : > { %v1131_v40 = vpop.eup %1130 }
 0x1ae   : > { %v677_v41 = vpop.xlane.xlu0 %676  ;;  %v693_v42 = vsel %vm561_vm1, %v1131_v40, 0.0 }
 0x1af   : > { %v681_v43 = vsub.f32 %v663_v27, %v677_v41  ;;  %694 = vadd.xlane.f32.xlu1 %v693_v42 }
 0x1b1   : > { %v1511_v44 = vpop.eup %1132  ;;  %v688_v45 = vmul.f32 1.442695, %v681_v43 }
 0x1b2   : > { %v696_v46 = vsel %vm561_vm1, %v1511_v44, 0.0 }
 0x1b3   : > { %1134 = vpow2.f32 %v688_v45  ;;  %697 = vadd.xlane.f32.xlu2 %v696_v46 }
 0x1b9   : > { %v1515_v47 = vpop.eup %1134 }
 0x1ba   : > { %v699_v48 = vsel %vm561_vm1, %v1515_v47, 0.0 }
 0x1bb   : > { %700 = vadd.xlane.f32.xlu2 %v699_v48 }
 0x21a   : > { %v692_v49 = vpop.xlane.xlu0 %691 }
 0x21b   : > { %1136 = vrcp.f32 %v692_v49  ;;  %v713_v54 = vand.u32 2147483648, %v692_v49  ;;  %v711_v56 = vand.u32 2147483647, %v692_v49  ;;  %vm707_vm3 = vweird.f32 %v692_v49 }
 0x21d   : > { %v714_v60 = vor.u32 1.1754944e-38, %v713_v54  ;;  %vm712_vm5 = vcmp.eq.f32.partialorder %v711_v56, 8.507059e+37 }
 0x221   : > { %v1137_v50 = vpop.eup %1136 }
 0x222   : > { %v703_v51 = vmul.f32 %v1137_v50, %v692_v49  ;;  %v695_v52 = vpop.xlane.xlu1 %694  ;;  %vm708_vm2 = vweird.f32 %v1137_v50 }
 0x223   : > { %1138 = vrcp.f32 %v695_v52  ;;  %vm709_vm4 = vmor %vm707_vm3, %vm708_vm2  ;;  %v725_v3 = vand.u32 2147483647, %v695_v52  ;;  %v727_v4 = vand.u32 2147483648, %v695_v52  ;;  %vm721_vm7 = vweird.f32 %v695_v52 }
 0x224   : > { %v704_v53 = vsub.f32 1.0, %v703_v51 }
 0x225   : > { %vm726_vm9 = vcmp.eq.f32.partialorder %v725_v3, 8.507059e+37  ;;  %v728_v10 = vor.u32 1.1754944e-38, %v727_v4 }
 0x226   : > { %v705_v55 = vmul.f32 %v1137_v50, %v704_v53  ;;  %v698_v57 = vpop.xlane.xlu2 %697 }
 0x227   : > { %1140 = vrcp.f32 %v698_v57  ;;  %v741_v11 = vand.u32 2147483648, %v698_v57  ;;  %v739_v14 = vand.u32 2147483647, %v698_v57  ;;  %vm735_vm11 = vweird.f32 %v698_v57 }
 0x228   : > { %v706_v58 = vadd.f32 %v1137_v50, %v705_v55 }
 0x229   : > { %v1139_v59 = vpop.eup %1138  ;;  %v742_v19 = vor.u32 1.1754944e-38, %v741_v11  ;;  %vm740_vm13 = vcmp.eq.f32.partialorder %v739_v14, 8.507059e+37 }
 0x22a   : > { %v710_v61 = vsel %vm709_vm4, %v1137_v50, %v706_v58  ;;  %v717_v62 = vmul.f32 %v1139_v59, %v695_v52  ;;  %vm722_vm6 = vweird.f32 %v1139_v59  ;;  %v1127_v50 = vld [vmem:[%s1585_s4] ss:$0 sm:$0xff] }
 0x22b   : > { %v715_v63 = vsel %vm712_vm5, %v714_v60, %v710_v61  ;;  %vm723_vm8 = vmor %vm721_vm7, %vm722_vm6 }
 0x22c   : > { %v758_v0 = vmul.f32 %v1129_v34, %v715_v63  ;;  %v718_v1 = vsub.f32 1.0, %v717_v62  ;;  %v855_v34 = vld [vmem:[%s1584_s3 + $0x8] sm:$0xff] }
 0x22d   : > { %v1141_v2 = vpop.eup %1140  ;;  %899 = vmatpush.msrb.mxu1 %v855_v34 }
 0x22e   : > { %v719_v5 = vmul.f32 %v1139_v59, %v718_v1  ;;  %v731_v6 = vmul.f32 %v1141_v2, %v698_v57  ;;  %v701_v7 = vpop.xlane.xlu2 %700  ;;  %1064 = vmatmul.msk.f32.vlgmr.msra.gmra.mxu0 %vm561_vm1, %v758_v0  ;;  %vm736_vm10 = vweird.f32 %v1141_v2 }
 0x22f   : > { %1142 = vrcp.f32 %v701_v7  ;;  %vm737_vm12 = vmor %vm735_vm11, %vm736_vm10  ;;  %v755_v25 = vand.u32 2147483648, %v701_v7  ;;  %v753_v27 = vand.u32 2147483647, %v701_v7  ;;  %vm749_vm15 = vweird.f32 %v701_v7 }
 0x230   : > { %v720_v8 = vadd.f32 %v1139_v59, %v719_v5  ;;  %v732_v9 = vsub.f32 1.0, %v731_v6 }
 0x231   : > { %v756_v29 = vor.u32 1.1754944e-38, %v755_v25  ;;  %vm754_vm3 = vcmp.eq.f32.partialorder %v753_v27, 8.507059e+37 }
 0x232   : > { %v724_v12 = vsel %vm723_vm8, %v1139_v59, %v720_v8  ;;  %v733_v13 = vmul.f32 %v1141_v2, %v732_v9 }
 0x233   : > { %v729_v15 = vsel %vm726_vm9, %v728_v10, %v724_v12 }
 0x234   : > { %v759_v16 = vmul.f32 %v1131_v40, %v729_v15  ;;  %v734_v17 = vadd.f32 %v1141_v2, %v733_v13 }
 0x235   : > { %v1143_v18 = vpop.eup %1142 }
 0x236   : > { %v738_v20 = vsel %vm737_vm12, %v1141_v2, %v734_v17  ;;  %v745_v21 = vmul.f32 %v1143_v18, %v701_v7  ;;  %1065 = vmatmul.msk.f32.vlgmr.msra.gmra.mxu1 %vm561_vm1, %v759_v16  ;;  %vm750_vm14 = vweird.f32 %v1143_v18 }
 0x237   : > { %v743_v22 = vsel %vm740_vm13, %v742_v19, %v738_v20  ;;  %vm751_vm2 = vmor %vm749_vm15, %vm750_vm14 }
 0x238   : > { %v746_v23 = vsub.f32 1.0, %v745_v21  ;;  %v760_v24 = vmul.f32 %v1511_v44, %v743_v22 }
 0x23a   : > { %v747_v26 = vmul.f32 %v1143_v18, %v746_v23  ;;  %1066 = vmatmul.msk.f32.vlgmr.msra.gmra.mxu2 %vm561_vm1, %v760_v24 }
 0x23c   : > { %v748_v28 = vadd.f32 %v1143_v18, %v747_v26 }
 0x23e   : > { %v752_v30 = vsel %vm751_vm2, %v1143_v18, %v748_v28 }
 0x23f   : > { %v757_v31 = vsel %vm754_vm3, %v756_v29, %v752_v30 }
 0x240   : > { %v761_v32 = vmul.f32 %v1515_v47, %v757_v31 }
 0x242   : > { %1067 = vmatmul.msk.f32.vlgmr.msra.gmra.mxu3 %vm561_vm1, %v761_v32 }
 0x2ab   : > { %v782_v37 = vpop.f32.mrf.mxu0 }
 0x2ac   : > { %1068 = vmatmul.msk.f32.vlgmr.msrb.gmra.mxu0 %vm561_vm1, %v782_v37 }
 0x2b3   : > { %v805_v38 = vpop.f32.mrf.mxu1 }
 0x2b4   : > { %1069 = vmatmul.msk.f32.vlgmr.msrb.gmra.mxu1 %vm561_vm1, %v805_v38 }
 0x2bd   : > { %v828_v39 = vpop.f32.mrf.mxu2 }
 0x2be   : > { %1070 = vmatmul.msk.f32.vlgmr.msrb.gmra.mxu2 %vm561_vm1, %v828_v39 }
 0x2c5   : > { %v851_v40 = vpop.f32.mrf.mxu3 }
 0x2c6   : > { %1071 = vmatmul.msk.f32.vlgmr.msrb.gmra.mxu3 %vm561_vm1, %v851_v40 }
 0x329   : > { %v878_v42 = vpop.f32.mrf.mxu0 }
 0x32a   : > { %v950_v45 = vsel %vm317_vm0, %v878_v42, 0.0 }
 0x331   : > { %v901_v41 = vpop.f32.mrf.mxu1 }
 0x332   : > { %v951_v44 = vsel %vm317_vm0, %v901_v41, 0.0 }
 0x333   : > { %v952_v47 = vadd.f32 %v951_v44, %v950_v45 }
 0x341   : > { %v924_v43 = vpop.f32.mrf.mxu2 }
 0x342   : > { %v953_v46 = vsel %vm317_vm0, %v924_v43, 0.0 }
 0x343   : > { %v954_v48 = vadd.f32 %v953_v46, %v952_v47 }
 0x349   : > { %v947_v49 = vpop.f32.mrf.mxu3 }
 0x34a   : > { %v955_v51 = vsel %vm317_vm0, %v947_v49, 0.0 }
 0x34b   : > { %v956_v52 = vadd.f32 %v955_v51, %v954_v48 }
 0x34d   : > { %v961_v53 = vadd.f32 %v1127_v50, %v956_v52 }
 0x34f   : > { %962 = vst.msk [vmem:[%s215_s23] sm:$0xff] %vm317_vm0, %v961_v53 }
 0x350   : > { %1171 = shalt.err (!%p1168_p3)
}
 0x351   : > { %1076 = dma.vmem_to_hbm [thread:$0]  (%p1276_p5), %s977_s22, 128, %s979_s25, %s964_s26  }
 0x352 PF: > { %p1082_p4 = scmp.ge.s32.totalorder %s1206_s21, 2  ;;  %s990_s10 = sand.u32 1, %s1194_s18  }
 0x353   : > { %s991_s13 = scalar_lea.sflag [#allocation3], %s990_s10 }
 0x354   : > { %p1079_p7 = pnand %p1082_p4, %p1280_p6 }
 0x356   : > { %p1080_p8 = pneg %p1079_p7 }
 0x358   : > { %1189 = dma.done.wait (%p1080_p8), %s991_s13, 128  }
 0x359   : > { %1191 = vsyncadd (%p1080_p8), %s991_s13, 4294967168  ;;  %p15_p9 = scmp.ge.s32.totalorder %s1263_s24, 4   ;;  %s1589_s18 = smov %s1198_s19 }
 0x35a   : > { %s1590_s19 = smov %s1202_s20  ;;  %s1591_s20 = smov %s1274_s27 }
 0x35b   : > { %s1592_s21 = smov %s1263_s24  ;;  %17 = sbr.rel (!%p15_p9) target bundleno = 3 (0x3), region = 75 }
 0x360   :  { %997 = vsyncpa [#allocation3], 1 }
 0x361   :  { %999 = vsyncpa [#allocation3 + $0x1], 1 }

</bundles_post_ra>
